<compile_context>
chip_gen: v5e
topology: v5e:2x2
jax: 0.10.0
libtpu: 0.0.40
codegen_flags: <defaults>
</compile_context>

<pallas_src>
import functools

import jax
import jax.numpy as jnp
from jax.experimental import pallas as pl
from jax.experimental.pallas import tpu as pltpu

_LANE = 128
_MIB = 1024 * 1024


def _psoftplus_kernel(w_ref, x_ref, o_ref, *, compute_dtype):
    # w_ref: SMEM (1,) f32 scalar weight
    # x_ref / o_ref: VMEM (rt, 128) tiles in the caller's dtype
    x = x_ref[...].astype(compute_dtype)
    # Stable softplus: max(x,0) + log1p(exp(-|x|)).  Matches torch.F.softplus
    # (beta=1, threshold=20): for x > 20 the log1p(exp(-x)) term (~2e-9) is
    # below the f32 ulp at 20.
    sp = jnp.maximum(x, 0.0) + jnp.log1p(jnp.exp(-jnp.abs(x)))
    w = w_ref[0].astype(compute_dtype)
    o_ref[...] = (w * sp).astype(o_ref.dtype)


def _device_supports_bf16_vector():
    # v5 family VPU/EUP lack native bf16 arithmetic; keep f32 compute there.
    try:
        kind = jax.devices()[0].device_kind.lower()
    except Exception:
        return False
    return "v5" not in kind


def psoftplus(x, weight, *, rows_tile=None):
    """weight: shape (1,) (num_parameters=1).  x: any shape / float dtype."""
    if weight.size != 1:
        # TODO(synk): per-channel weight (num_parameters=C) needs a channel-aware
        # layout; the module default (num_parameters=1) is a scalar weight.
        raise NotImplementedError("psoftplus kernel supports num_parameters=1 only")

    orig_shape = x.shape
    dtype = x.dtype
    itemsize = dtype.itemsize
    total = x.size

    # Native bf16 compute on v6e/v7x; f32 everywhere else.
    if dtype == jnp.bfloat16 and _device_supports_bf16_vector():
        compute_dtype = jnp.bfloat16
    else:
        compute_dtype = jnp.float32

    w_smem = weight.reshape(1).astype(jnp.float32)

    def _jnp_psoftplus(v):  # tiny-input / tail path, no kernel launch
        vf = v.astype(compute_dtype)
        sp = jnp.maximum(vf, 0.0) + jnp.log1p(jnp.exp(-jnp.abs(vf)))
        return (w_smem[0].astype(compute_dtype) * sp).astype(dtype)

    x_flat = x.reshape(-1)
    aligned = (total // _LANE) * _LANE
    if aligned == 0:
        return _jnp_psoftplus(x_flat).reshape(orig_shape)

    rows = aligned // _LANE
    sub = max(8, 32 // itemsize)  # native sublane tile: 8 f32, 16 bf16, 32 int8

    if rows_tile is None:
        # ~6 MiB blocks -> ~24 MiB VMEM with in+out double buffering (v7x-safe).
        rows_tile = 12288 if itemsize >= 4 else 24576

    rt = min(rows_tile, rows)
    if rt == rows:
        # Split into >=2 blocks so ("parallel",) can use both v7x TensorCores.
        if rows >= 2 * sub:
            half = -(-rows // 2)            # cdiv(rows, 2)
            half = -(-half // sub) * sub    # align up to the native sublane tile
            if half < rows:
                rt = half
    else:
        rt = max(sub, (rt // sub) * sub)

    grid = (pl.cdiv(rows, rt),)

    block_bytes = rt * _LANE * itemsize
    vmem_limit = int(min(max(4 * block_bytes + 4 * _MIB, 8 * _MIB), 48 * _MIB))

    kernel = functools.partial(_psoftplus_kernel, compute_dtype=compute_dtype)

    out2d = pl.pallas_call(
        kernel,
        out_shape=jax.ShapeDtypeStruct((rows, _LANE), dtype),
        grid=grid,
        in_specs=[
            pl.BlockSpec(memory_space=pltpu.MemorySpace.SMEM),   # scalar weight
            pl.BlockSpec((rt, _LANE), lambda i: (i, 0)),         # x tiles
        ],
        out_specs=pl.BlockSpec((rt, _LANE), lambda i: (i, 0)),
        compiler_params=pltpu.CompilerParams(
            dimension_semantics=("parallel",),
            vmem_limit_bytes=vmem_limit,
        ),
    )(w_smem, x_flat[:aligned].reshape(rows, _LANE))

    out_flat = out2d.reshape(-1)
    if aligned != total:
        # Ragged tail (<128 elems): plain jnp, no full-array pad/slice passes.
        out_flat = jnp.concatenate([out_flat, _jnp_psoftplus(x_flat[aligned:])])
    return out_flat.reshape(orig_shape)


def psoftplus_ref(x, weight):
    # pure-JAX reference (matches torch: weight * F.softplus(x)), f32 compute
    xf = x.astype(jnp.float32)
    sp = jnp.where(xf > 20.0, xf, jnp.log1p(jnp.exp(jnp.minimum(xf, 20.0))))
    return (weight[0].astype(jnp.float32) * sp).astype(x.dtype)


if __name__ == "__main__":
    key = jax.random.PRNGKey(0)
    # NCHW input, small shapes (batch=2, channels=4, spatial=16x16)
    x = jax.random.normal(key, (2, 4, 16, 16), dtype=jnp.float32) * 5.0
    # Deterministic init, matching torch: weight filled with 1.0, num_parameters=1
    weight = jnp.ones((1,), dtype=jnp.float32)

    out = jax.block_until_ready(psoftplus(x, weight))
    ref = psoftplus_ref(x, weight)
    assert out.shape == x.shape and out.dtype == x.dtype
    assert jnp.allclose(out, ref, atol=1e-5, rtol=1e-5), "f32 mismatch vs reference"

    # bf16 path: bf16 I/O; compute is native bf16 on v6e/v7x, f32 on v5e.
    x_bf16 = x.astype(jnp.bfloat16)
    out_bf16 = jax.block_until_ready(psoftplus(x_bf16, weight))
    ref_bf16 = psoftplus_ref(x_bf16, weight)
    assert out_bf16.dtype == jnp.bfloat16 and out_bf16.shape == x.shape
    assert jnp.allclose(out_bf16.astype(jnp.float32),
                        ref_bf16.astype(jnp.float32),
                        atol=3e-2, rtol=3e-2), "bf16 mismatch vs reference"

    # Non-128-divisible size exercises the prefix-kernel + jnp-tail path.
    x_tail = jax.random.normal(jax.random.PRNGKey(1), (2, 3, 67), dtype=jnp.float32) * 5.0
    out_tail = jax.block_until_ready(psoftplus(x_tail, weight))
    ref_tail = psoftplus_ref(x_tail, weight)
    assert out_tail.shape == x_tail.shape
    assert jnp.allclose(out_tail, ref_tail, atol=1e-5, rtol=1e-5), "tail-path mismatch"

    print("KERNEL_OK")
</pallas_src>

<mosaic_0001>
module attributes {stable_mosaic.version = 11 : i64} {
  func.func @_psoftplus_kernel(%arg0: i32, %arg1: memref<1xf32, #tpu.memory_space<smem>>, %arg2: memref<8x128xf32, #tpu.memory_space<vmem>>, %arg3: memref<8x128xf32, #tpu.memory_space<vmem>>) attributes {dimension_semantics = [#tpu.dimension_semantics<parallel>], iteration_bounds = array<i64: 2>, scalar_prefetch = 0 : i64, scratch_operands = 0 : i64, tpu.core_type = #tpu.core_type<tc>, window_params = [{transform_indices = @transform_0, window_bounds = array<i64: 1>}, {transform_indices = @transform_1, window_bounds = array<i64: 8, 128>}, {transform_indices = @transform_2, window_bounds = array<i64: 8, 128>}]} {
    %c0 = arith.constant 0 : index
    %c0_0 = arith.constant 0 : index
    %0 = vector.load %arg2[%c0, %c0_0] : memref<8x128xf32, #tpu.memory_space<vmem>>, vector<8x128xf32>
    %cst = arith.constant 0.000000e+00 : f32
    %1 = vector.broadcast %cst : f32 to vector<8x128xf32>
    %2 = arith.maximumf %0, %1 : vector<8x128xf32>
    %3 = math.absf %0 : vector<8x128xf32>
    %cst_1 = arith.constant 0.000000e+00 : f32
    %4 = vector.broadcast %cst_1 : f32 to vector<8x128xf32>
    %5 = arith.subf %4, %3 : vector<8x128xf32>
    %6 = math.exp %5 : vector<8x128xf32>
    %7 = math.log1p %6 : vector<8x128xf32>
    %8 = arith.addf %2, %7 : vector<8x128xf32>
    %c0_2 = arith.constant 0 : index
    %9 = memref.load %arg1[%c0_2] : memref<1xf32, #tpu.memory_space<smem>>
    %10 = vector.broadcast %9 : f32 to vector<8x128xf32>
    %11 = arith.mulf %10, %8 : vector<8x128xf32>
    %c0_3 = arith.constant 0 : index
    %c0_4 = arith.constant 0 : index
    %12 = vector.load %arg3[%c0_3, %c0_4] : memref<8x128xf32, #tpu.memory_space<vmem>>, vector<8x128xf32>
    tpu.vector_store %arg3[%c0_3, %c0_4], %11 {strides = array<i32>} : memref<8x128xf32, #tpu.memory_space<vmem>>, vector<8x128xf32>,
    return
  }
  func.func @transform_0(%arg0: i32) -> i32 {
    %c0_i32 = arith.constant 0 : i32
    %c0_i32_0 = arith.constant 0 : i32
    return %c0_i32 : i32
  }
  func.func @transform_1(%arg0: i32) -> (i32, i32) {
    %c0_i32 = arith.constant 0 : i32
    %c0_i32_0 = arith.constant 0 : i32
    return %arg0, %c0_i32 : i32, i32
  }
  func.func @transform_2(%arg0: i32) -> (i32, i32) {
    %c0_i32 = arith.constant 0 : i32
    %c0_i32_0 = arith.constant 0 : i32
    return %arg0, %c0_i32 : i32, i32
  }
}

</mosaic_0001>

<bundles_post_ra>
// kernel: tpu_custom_call.1
= control target key start
LH: loop header
LB: loop body
LE: loop exit
PB: predicated region body
PF: predicated region fallthrough
CT: control target
= control target key end

     0   :  { %s573_s0 = inlined_call_operand.<no memory space> [shape: f32[1], index: 0, kind: input, shape index: {}]   ;;  %s574_s1 = inlined_call_operand.hbm [shape: f32[16,128], index: 1, kind: input, shape index: {}]   ;;  %s575_s2 = inlined_call_operand.hbm [shape: f32[16,128], index: 2, kind: output, shape index: {}]  }
   0x1   :  { %7 = sst [smem:[#allocation2]] %s573_s0 }
   0x2   :  { %8 = vsyncpa [#allocation4], 0 }
   0x3   :  { %10 = vsyncpa [#allocation4 + $0x1], 0 }
   0x4   :  { %11 = vsyncpa [#allocation5], 0 }
   0x5   :  { %13 = vsyncpa [#allocation5 + $0x1], 0  ;;  %s446_s11 = smov 0   ;;  %s448_s12 = smov 0  }
   0x6   :  { %s450_s13 = smov 0   ;;  %s452_s14 = smov 0  }
   0x7 LB: > { %s467_s0 = sadd.s32 4294967295, %s426_s14   ;;  %s268_s15 = sadd.s32 4294967294, %s426_s14   ;;  %s426_s14 = sphi %s452_s14, %s585_s14   ;;  %s422_s13 = sphi %s450_s13, %s584_s13   ;;  %s418_s12 = sphi %s448_s12, %s583_s12   ;;  %s414_s11 = sphi %s446_s11, %s582_s11  }
   0x8   : > { %s471_s16 = sadd.s32 1, %s426_s14   ;;  %s47_s17 = sadd.s32 1, %s422_s13 }
   0x9   : > { %s44_s18 = ssub.s32 %s426_s14, %s471_s16  ;;  %p54_p0 = scmp.ne.s32.totalorder %s422_s13, %s418_s12 }
   0xa   : > { %p45_p1 = scmp.eq.s32.totalorder %s44_s18, 0  ;;  %p55_p2 = scmp.eq.s32.totalorder %s426_s14, 0 }
   0xb   : > { %p60_p3 = scmp.ne.s32.totalorder %s418_s12, %s414_s11  ;;  %p61_p4 = scmp.eq.s32.totalorder %s467_s0, 0 }
   0xc   : > { %s483_s19 = scalar_select %p45_p1, %s422_s13, %s47_s17  }
   0xd   : > { %p485_p5 = por %p55_p2, %p54_p0  ;;  %p489_p6 = por %p61_p4, %p60_p3 }
   0xe   : > { %p84_p7 = scmp.eq.s32.totalorder %s467_s0, 1  ;;  %p90_p8 = scmp.eq.s32.totalorder %s268_s15, 1 }
   0xf   : > { %p292_p10 = scmp.lt.s32.totalorder %s426_s14, 2  ;;  %s113_s24 = sand.u32 1, %s422_s13  }
  0x10   : > { %p496_p11 = por %p84_p7, %p54_p0  ;;  %p500_p12 = por %p90_p8, %p60_p3 }
  0x11   : > { %s272_s25 = sshll.u32 %s426_s14, 3  ;;  %s271_s26 = sshll.u32 %s113_s24, 3 }
  0x12   : > { %s121_s29 = scalar_lea.hbm %s574_s1, %s272_s25  ;;  %s117_s3 = scalar_lea.vmem [#allocation3], %s271_s26 }
  0x13   : > { %s123_s30 = sshll.u32 %s121_s29, 4  ;;  %s125_s4 = sshll.u32 %s117_s3, 4  ;;  %s124_s30 = int_to_ptr.hbm [resolvable:$true] %s123_s30  ;;  %s126_s4 = int_to_ptr.vmem [resolvable:$true] %s125_s4 }
  0x14   : > { %p511_p13 = pnand %p292_p10, %p485_p5  ;;  %p273_p0 = scmp.ge.s32.totalorder %s426_s14, 1 }
  0x15   : > { %p130_p1 = scmp.lt.s32.totalorder %s426_s14, 3  ;;  %s114_s6 = scalar_lea.sflag [#allocation4], %s113_s24 }
  0x16   : > { %s330_s7 = sshra.s32 %s124_s30, 4  ;;  %p334_p3 = pneg %p511_p13  ;;  %s331_s7 = int_to_ptr.hbm [resolvable:$true] %s330_s7 }
  0x17   : > { %s332_s8 = scalar_lea.hbm %s331_s7, 8  ;;  %s337_s15 = scalar_lea.hbm %s574_s1, 16 }
  0x18   : > { %p333_p2 = scmp.ne.s32.totalorder %s331_s7, %s332_s8  ;;  %p338_p5 = scmp.lt.s32.totalorder %s331_s7, %s574_s1 }
  0x19   : > { %p339_p8 = scmp.lt.s32.totalorder %s337_s15, %s332_s8 }
  0x1a   : > { %p335_p4 = pnand %p334_p3, %p333_p2 }
  0x1b   : > { %p340_p10 = por %p339_p8, %p338_p5 }
  0x1c   : > { %p336_p7 = pneg %p335_p4 }
  0x1e   : > { %p341_p9 = pnand %p340_p10, %p336_p7 }
  0x20   : > { %344 = shalt.err (!%p341_p9)
}
  0x21   : > { %287 = dma.hbm_to_vmem [thread:$0]  (!%p511_p13), %s124_s30, 128, %s126_s4, %s114_s6  }
  0x22   : > { %p131_p2 = pnand %p273_p0, %p130_p1 }
  0x23   : > { %s532_s20 = sand.u32 (!%p131_p2), 1, %s418_s12  }
  0x24   : > { %134 = sbr.rel (%p131_p2) target bundleno = 75 (0x4b), region = 28  ;;  %s274_s24 = sshll.u32 (!%p131_p2), %s532_s20, 3 }
  0x25   : > { %s137_s25 = scalar_lea.sflag (!%p131_p2), [#allocation4], %s532_s20  ;;  %s140_s26 = scalar_lea.vmem (!%p131_p2), [#allocation3], %s274_s24 }
  0x29   : > { %405 = dma.done.wait (%p489_p6), %s137_s25, 128  }
  0x2a   : > { %407 = vsyncadd (%p489_p6), %s137_s25, 4294967168  ;;  %v162_v0 = vld [vmem:[%s140_s26] sm:$0xff]  ;;  %s178_s27 = sld [smem:[#allocation2]]  ;;  %s277_s28 = sshll.u32 %s467_s0, 3 }
  0x2b   : > { %v164_v1 = vand.u32 2147483647, %v162_v0  ;;  %v163_v11 = vmax.f32 %v162_v0, 0.0  ;;  %s193_s30 = scalar_lea.hbm %s575_s2, %s277_s28  ;;  %s161_s3 = scalar_lea.vmem [#allocation6], %s274_s24 }
  0x2c   : > { %s195_s4 = sshll.u32 %s161_s3, 4  ;;  %s197_s5 = sshll.u32 %s193_s30, 4  ;;  %s196_s4 = int_to_ptr.vmem [resolvable:$true] %s195_s4  ;;  %s198_s5 = int_to_ptr.hbm [resolvable:$true] %s197_s5 }
  0x2d   : > { %v165_v2 = vsub.f32 0.0, %v164_v1  ;;  %s183_s0 = scalar_lea.sflag [#allocation5], %s532_s20  ;;  %s374_s6 = sshra.s32 %s198_s5, 4  ;;  %s375_s6 = int_to_ptr.hbm [resolvable:$true] %s374_s6 }
  0x2e   : > { %s376_s7 = scalar_lea.hbm %s375_s6, 8  ;;  %s380_s10 = scalar_lea.hbm %s575_s2, 16 }
  0x2f   : > { %v166_v3 = vmul.f32 1.442695, %v165_v2  ;;  %p377_p6 = scmp.ne.s32.totalorder %s375_s6, %s376_s7  ;;  %p381_p0 = scmp.lt.s32.totalorder %s375_s6, %s575_s2 }
  0x30   : > { %v179_v14 = vstv %s178_s27  ;;  %p382_p1 = scmp.lt.s32.totalorder %s380_s10, %s376_s7 }
  0x31   : > { %326 = vpow2.f32 %v166_v3  ;;  %p378_p9 = pnand %p377_p6, %p496_p11 }
  0x32   : > { %p383_p3 = por %p382_p1, %p381_p0 }
  0x33   : > { %p379_p13 = pneg %p378_p9 }
  0x35   : > { %p384_p4 = pnand %p383_p3, %p379_p13 }
  0x37   : > { %v327_v4 = vpop.eup %326 }
  0x38   : > { %v168_v5 = vadd.f32 1.0, %v327_v4  ;;  %v171_v6 = vmul.f32 -0.5, %v327_v4  ;;  %v174_v8 = vand.u32 2147483647, %v327_v4 }
  0x3a   : > { %328 = vlog2.f32 %v168_v5  ;;  %v172_v7 = vadd.f32 1.0, %v171_v6  ;;  %vm175_vm0 = vcmp.lt.f32.partialorder %v174_v8, 0.0004427343 }
  0x3c   : > { %v173_v9 = vmul.f32 %v327_v4, %v172_v7 }
  0x40   : > { %v329_v10 = vpop.eup %328 }
  0x41   : > { %v170_v12 = vmul.f32 0.6931472, %v329_v10 }
  0x43   : > { %v176_v13 = vsel %vm175_vm0, %v173_v9, %v170_v12 }
  0x44   : > { %v177_v15 = vadd.f32 %v176_v13, %v163_v11 }
  0x46   : > { %v180_v16 = vmul.f32 %v179_v14, %v177_v15 }
  0x48   : > { %181 = vst [vmem:[%s161_s3] sm:$0xff] %v180_v16 }
  0x49   : > { %387 = shalt.err (!%p384_p4)
}
  0x4a   : > { %282 = dma.vmem_to_hbm [thread:$0]  (%p496_p11), %s196_s4, 128, %s198_s5, %s183_s0  }
  0x4b PF: > { %s209_s18 = sand.u32 1, %s414_s11   ;;  %p581_p7 = scmp.ge.s32.totalorder %s426_s14, 2 }
  0x4c   : > { %s210_s20 = scalar_lea.sflag [#allocation5], %s209_s18 }
  0x4d   : > { %p289_p5 = pnand %p581_p7, %p500_p12 }
  0x4f   : > { %p290_p8 = pneg %p289_p5 }
  0x51   : > { %409 = dma.done.wait (%p290_p8), %s210_s20, 128  }
  0x52   : > { %411 = vsyncadd (%p290_p8), %s210_s20, 4294967168  ;;  %p16_p10 = scmp.ge.s32.totalorder %s471_s16, 4   ;;  %s582_s11 = smov %s418_s12 }
  0x53   : > { %s583_s12 = smov %s422_s13  ;;  %s584_s13 = smov %s483_s19 }
  0x54   : > { %s585_s14 = smov %s471_s16  ;;  %18 = sbr.rel (!%p16_p10) target bundleno = 7 (0x7), region = 73 }
  0x59   :  { %216 = vsyncpa [#allocation4], 1 }
  0x5a   :  { %218 = vsyncpa [#allocation4 + $0x1], 1 }
  0x5b   :  { %219 = vsyncpa [#allocation5], 1 }
  0x5c   :  { %221 = vsyncpa [#allocation5 + $0x1], 1 }

</bundles_post_ra>
